<compile_context>
chip_gen: v7x
topology: tpu7x:2x2x1
jax: 0.10.0
libtpu: 0.0.40
codegen_flags: <defaults>
</compile_context>

<pallas_src>
import functools

import jax
import jax.numpy as jnp
from jax.experimental import pallas as pl
from jax.experimental.pallas import tpu as pltpu


def _policy_kernel(x_ref, p_ref, out_ref, *, s_size, h_size, a_size):
    S, H, A = s_size, h_size, a_size
    x = x_ref[...]                                   # (tb, S)

    # fc1 + ReLU. W1 / b1 are sublane slices of the packed param slab.
    w1 = p_ref[0:S, :]                               # (S, H)
    b1 = p_ref[S:S + 1, :]                           # (1, H)
    h = jnp.dot(x, w1, preferred_element_type=jnp.float32) + b1
    h = jnp.maximum(h, 0.0)

    if A == 2:
        # softmax over 2 classes == sigmoid of the logit difference:
        #   p0 = 1 / (1 + exp(-(logit0 - logit1))),   p1 = 1 - p0
        w2d = p_ref[S + 1:S + 2, :]                  # (1, H) = w2[:,0]-w2[:,1]
        b2d = p_ref[S + 2:S + 3, 0:1]                # (1, 1) = b2[0]-b2[1]
        d = jnp.sum(h * w2d, axis=1, keepdims=True) + b2d       # (tb, 1)
        p0 = pl.reciprocal(1.0 + jnp.exp(-d), approx=True)      # EUP sigmoid
        col = jax.lax.broadcasted_iota(jnp.int32, out_ref.shape, 1)
        out_ref[...] = jnp.where(col == 0, p0, 1.0 - p0).astype(out_ref.dtype)
    else:
        # General a_size fallback: fc2 + numerically stable softmax.
        w2t = p_ref[S + 1:S + 1 + A, :]              # (A, H) = W2^T
        b2 = p_ref[S + 1 + A:S + 2 + A, 0:A]         # (1, A)
        logits = jnp.einsum("bh,ah->ba", h, w2t,
                            preferred_element_type=jnp.float32) + b2
        m = jnp.max(logits, axis=1, keepdims=True)
        e = jnp.exp(logits - m)
        denom = jnp.sum(e, axis=1, keepdims=True)
        out_ref[...] = (e * pl.reciprocal(denom, approx=True)).astype(out_ref.dtype)


def pack_params(w1_t, b1, w2_t, b2):
    """Pack PyTorch-layout params (W: (out, in), b: (out,)) into one f32 slab.

    a_size == 2 layout, shape (S+3, H):
      rows [0,S): W1 in (in, out) layout   | row S: b1
      row S+1: w2[:,0]-w2[:,1]             | row S+2 lane 0: b2[0]-b2[1]
    General a_size layout, shape (S+2+A, H): W1, b1, W2^T, b2 (lanes 0..A-1).
    """
    H, S = w1_t.shape
    A = w2_t.shape[0]
    w1 = w1_t.T.astype(jnp.float32)                  # (S, H)
    w2 = w2_t.T.astype(jnp.float32)                  # (H, A)
    if A == 2:
        p = jnp.zeros((S + 3, H), jnp.float32)
        p = p.at[0:S, :].set(w1)
        p = p.at[S, :].set(b1.astype(jnp.float32))
        p = p.at[S + 1, :].set(w2[:, 0] - w2[:, 1])
        p = p.at[S + 2, 0].set(b2[0] - b2[1])
    else:
        assert A <= H, "general-path packing assumes a_size <= h_size"
        p = jnp.zeros((S + 2 + A, H), jnp.float32)
        p = p.at[0:S, :].set(w1)
        p = p.at[S, :].set(b1.astype(jnp.float32))
        p = p.at[S + 1:S + 1 + A, :].set(w2.T)
        p = p.at[S + 1 + A, 0:A].set(b2.astype(jnp.float32))
    return p


def policy_forward(x, packed_params, *, s_size=4, h_size=16, a_size=2,
                   batch_tile=1024):
    """softmax(fc2(relu(fc1(x))), axis=1).  x: (B, s_size) float32."""
    B, S = x.shape
    assert S == s_size
    R, H = packed_params.shape
    assert H == h_size

    tb = min(B, batch_tile)
    grid = (pl.cdiv(B, tb),)

    kernel = functools.partial(_policy_kernel, s_size=s_size,
                               h_size=h_size, a_size=a_size)
    return pl.pallas_call(
        kernel,
        out_shape=jax.ShapeDtypeStruct((B, a_size), jnp.float32),
        grid=grid,
        in_specs=[
            pl.BlockSpec((tb, S), lambda i: (i, 0)),   # batch-tiled activations
            pl.BlockSpec((R, H), lambda i: (0, 0)),    # params resident in VMEM
        ],
        out_specs=pl.BlockSpec((tb, a_size), lambda i: (i, 0)),
        compiler_params=pltpu.CompilerParams(
            # Batch axis is embarrassingly parallel: v7x shards it across its
            # 2 TensorCores; on v5e/v6e it is just a (trivial) serial loop.
            dimension_semantics=("parallel",),
        ),
    )(x, packed_params)


def init_params(key, s_size=4, h_size=16, a_size=2):
    """PyTorch nn.Linear-shaped params: W is (out, in), b is (out,)."""
    k1, k2, k3, k4 = jax.random.split(key, 4)
    w1_t = jax.random.uniform(k1, (h_size, s_size), jnp.float32, -0.5, 0.5)
    b1 = jax.random.uniform(k2, (h_size,), jnp.float32, -0.5, 0.5)
    w2_t = jax.random.uniform(k3, (a_size, h_size), jnp.float32, -0.5, 0.5)
    b2 = jax.random.uniform(k4, (a_size,), jnp.float32, -0.5, 0.5)
    return w1_t, b1, w2_t, b2


def reference_forward(x, w1_t, b1, w2_t, b2):
    h = jnp.maximum(x @ w1_t.T + b1, 0.0)
    logits = h @ w2_t.T + b2
    return jax.nn.softmax(logits, axis=1)


if __name__ == "__main__":
    key = jax.random.PRNGKey(0)
    kx, kp = jax.random.split(key)

    B, S, H, A = 8, 4, 16, 2
    x = jax.random.normal(kx, (B, S), jnp.float32)
    w1_t, b1, w2_t, b2 = init_params(kp, s_size=S, h_size=H, a_size=A)

    packed = pack_params(w1_t, b1, w2_t, b2)   # done once per weight update
    out = policy_forward(x, packed, s_size=S, h_size=H, a_size=A)
    out = jax.block_until_ready(out)

    ref = reference_forward(x, w1_t, b1, w2_t, b2)
    assert out.shape == (B, A)
    # approx=True reciprocal => probabilities accurate to ~3e-4; 1e-3 is ample.
    assert jnp.allclose(out, ref, atol=1e-3, rtol=1e-3), "mismatch vs reference"
    assert jnp.allclose(jnp.sum(out, axis=1), 1.0, atol=1e-5), "rows must sum to 1"

    print("KERNEL_OK")
</pallas_src>

<mosaic_0001>
module attributes {stable_mosaic.version = 11 : i64} {
  func.func @_policy_kernel(%arg0: i32, %arg1: memref<8x4xf32, #tpu.memory_space<vmem>>, %arg2: memref<7x16xf32, #tpu.memory_space<vmem>>, %arg3: memref<8x2xf32, #tpu.memory_space<vmem>>) attributes {dimension_semantics = [#tpu.dimension_semantics<parallel>], iteration_bounds = array<i64: 1>, scalar_prefetch = 0 : i64, scratch_operands = 0 : i64, tpu.core_type = #tpu.core_type<tc>, window_params = [{transform_indices = @transform_0, window_bounds = array<i64: 8, 4>}, {pipeline_mode = #tpu.pipeline_mode<synchronous>, transform_indices = @transform_1, window_bounds = array<i64: 7, 16>}, {transform_indices = @transform_2, window_bounds = array<i64: 8, 2>}]} {
    %c0 = arith.constant 0 : index
    %c0_0 = arith.constant 0 : index
    %0 = vector.load %arg1[%c0, %c0_0] : memref<8x4xf32, #tpu.memory_space<vmem>>, vector<8x4xf32>
    %c0_1 = arith.constant 0 : index
    %c0_2 = arith.constant 0 : index
    %1 = vector.load %arg2[%c0_1, %c0_2] : memref<7x16xf32, #tpu.memory_space<vmem>>, vector<4x16xf32>
    %c4 = arith.constant 4 : index
    %c0_3 = arith.constant 0 : index
    %2 = vector.load %arg2[%c4, %c0_3] : memref<7x16xf32, #tpu.memory_space<vmem>>, vector<1x16xf32>
    %cst = arith.constant dense<0.000000e+00> : vector<8x16xf32>
    %3 = tpu.matmul %0, %1, %cst {dimension_numbers = #tpu.dot_dimension_numbers<[1], [0], [0], [1], [0, 0, 1, 1], [], []>} : vector<8x4xf32>, vector<4x16xf32>, vector<8x16xf32> -> vector<8x16xf32>
    %4 = vector.broadcast %2 : vector<1x16xf32> to vector<8x16xf32>
    %5 = arith.addf %3, %4 : vector<8x16xf32>
    %cst_4 = arith.constant 0.000000e+00 : f32
    %6 = vector.broadcast %cst_4 : f32 to vector<8x16xf32>
    %7 = arith.maximumf %5, %6 : vector<8x16xf32>
    %c5 = arith.constant 5 : index
    %c0_5 = arith.constant 0 : index
    %8 = vector.load %arg2[%c5, %c0_5] : memref<7x16xf32, #tpu.memory_space<vmem>>, vector<1x16xf32>
    %c6 = arith.constant 6 : index
    %c0_6 = arith.constant 0 : index
    %9 = vector.load %arg2[%c6, %c0_6] : memref<7x16xf32, #tpu.memory_space<vmem>>, vector<1x1xf32>
    %10 = vector.broadcast %8 : vector<1x16xf32> to vector<8x16xf32>
    %11 = arith.mulf %7, %10 : vector<8x16xf32>
    %cst_7 = arith.constant dense<0.000000e+00> : vector<8xf32>
    %12 = vector.multi_reduction <add>, %11, %cst_7 [1] : vector<8x16xf32> to vector<8xf32>
    %13 = vector.shape_cast %12 : vector<8xf32> to vector<8x1xf32>
    %14 = vector.broadcast %9 : vector<1x1xf32> to vector<8x1xf32>
    %15 = arith.addf %13, %14 : vector<8x1xf32>
    %cst_8 = arith.constant 0.000000e+00 : f32
    %16 = vector.broadcast %cst_8 : f32 to vector<8x1xf32>
    %17 = arith.subf %16, %15 : vector<8x1xf32>
    %18 = math.exp %17 : vector<8x1xf32>
    %cst_9 = arith.constant 1.000000e+00 : f32
    %19 = vector.broadcast %cst_9 : f32 to vector<8x1xf32>
    %20 = arith.addf %19, %18 : vector<8x1xf32>
    %21 = tpu.reciprocal %20 {approx = true} : vector<8x1xf32> -> vector<8x1xf32>
    %22 = tpu.iota {dimensions = array<i32: 1>} : vector<8x2xi32>
    %c0_i32 = arith.constant 0 : i32
    %23 = vector.broadcast %c0_i32 : i32 to vector<8x2xi32>
    %24 = arith.cmpi eq, %22, %23 : vector<8x2xi32>
    %cst_10 = arith.constant 1.000000e+00 : f32
    %25 = vector.broadcast %cst_10 : f32 to vector<8x1xf32>
    %26 = arith.subf %25, %21 : vector<8x1xf32>
    %27 = vector.shape_cast %21 : vector<8x1xf32> to vector<8x1xf32>
    %28 = vector.broadcast %27 : vector<8x1xf32> to vector<8x2xf32>
    %29 = vector.shape_cast %26 : vector<8x1xf32> to vector<8x1xf32>
    %30 = vector.broadcast %29 : vector<8x1xf32> to vector<8x2xf32>
    %31 = arith.select %24, %28, %30 : vector<8x2xi1>, vector<8x2xf32>
    %c0_11 = arith.constant 0 : index
    %c0_12 = arith.constant 0 : index
    %32 = vector.load %arg3[%c0_11, %c0_12] : memref<8x2xf32, #tpu.memory_space<vmem>>, vector<8x2xf32>
    tpu.vector_store %arg3[%c0_11, %c0_12], %31 {strides = array<i32>} : memref<8x2xf32, #tpu.memory_space<vmem>>, vector<8x2xf32>,
    return
  }
  func.func @transform_0(%arg0: i32) -> (i32, i32) {
    %c0_i32 = arith.constant 0 : i32
    %c0_i32_0 = arith.constant 0 : i32
    return %arg0, %c0_i32 : i32, i32
  }
  func.func @transform_1(%arg0: i32) -> (i32, i32) {
    %c0_i32 = arith.constant 0 : i32
    %c0_i32_0 = arith.constant 0 : i32
    %c0_i32_1 = arith.constant 0 : i32
    return %c0_i32, %c0_i32_0 : i32, i32
  }
  func.func @transform_2(%arg0: i32) -> (i32, i32) {
    %c0_i32 = arith.constant 0 : i32
    %c0_i32_0 = arith.constant 0 : i32
    return %arg0, %c0_i32 : i32, i32
  }
}

</mosaic_0001>

<bundles_post_ra>
// kernel: tpu_custom_call.1
= control target key start
LH: loop header
LB: loop body
LE: loop exit
PB: predicated region body
PF: predicated region fallthrough
CT: control target
= control target key end

     0   :  { %vm22_vm0 = vcmask 1043456   ;;  %vm18_vm1 = vcmask 31744   ;;  %v160_v0 = vmov 0.0   ;;  %vm161_vm2 = vmmov 0   ;;  %s196_s1 = inlined_call_operand.vmem [shape: f32[7,16], index: 1, kind: input, shape index: {}]   ;;  %s197_s0 = inlined_call_operand.vmem [shape: f32[8,4], index: 0, kind: input, shape index: {}]   ;;  %s198_s2 = inlined_call_operand.vmem [shape: f32[8,2], index: 2, kind: output, shape index: {}]  }
   0x1   :  { %146 = vmatprep.subr.mxu0 %v160_v0  ;;  %v12_v1 = vld [vmem:[%s196_s1] sm:$0xf]  ;;  %148 = vmatprep.mubr.msk.f32.mxu0 %vm161_vm2, %v160_v0  ;;  %v139_v3 = vld [vmem:[%s196_s1 + $0x4] ss:$0 sm:$0xff]  ;;  %v142_v7 = vld [vmem:[%s196_s1 + $0x5] ss:$0 sm:$0xff]  ;;  %v118_v21 = vlaneseq }
   0x2   :  { %v11_v2 = vld [vmem:[%s197_s0] sm:$0xff]  ;;  %147 = vmatpush3.msk.msra.mxu0 %vm22_vm0, %v12_v1  ;;  %vm104_vm3 = vcmask 130048   ;;  %v162_v11 = vmov 0   ;;  %vm133_vm5 = vcmask 15360  }
   0x3   :  { %149 = vmatmul.mubr.msk.f32.vlgmr.msra.gmra.mrb[0].mxu0 %vm18_vm1, %v11_v2  ;;  %154 = vset.pattern.permute.xlu0 %v162_v11  ;;  %v143_v12 = vld [vmem:[%s196_s1 + $0x6] ss:$0 sm:$0xff]  ;;  %v119_v22 = vand.u32 127, %v118_v21 }
   0x4   :  { %155 = vset.pattern.permute.xlu1 %v162_v11 }
   0x5   :  { %vm120_vm4 = vcmp.eq.s32.totalorder %v119_v22, 0 }
  0xd6   :  { %v92_v4 = vpop.f32.mrb[0].mxu0 }
  0xd7   :  { %v93_v5 = vadd.f32 %v139_v3, %v92_v4  ;;  %v150_v6 = vpop.f32.mrb[1].mxu0 }
  0xd9   :  { %v96_v8 = vmax.f32 %v93_v5, 0.0 }
  0xdb   :  { %v103_v9 = vmul.f32 %v142_v7, %v96_v8 }
  0xdd   :  { %v105_v10 = vsel %vm104_vm3, %v103_v9, 0.0 }
  0xde   :  { %106 = vadd.xlane.f32.xlu0 %v105_v10 }
 0x16b   :  { %v107_v13 = vpop.xlane.xlu0 %106 }
 0x16c   :  { %v112_v14 = vadd.f32 %v143_v12, %v107_v13 }
 0x16e   :  { %v113_v15 = vsub.f32 0.0, %v112_v14 }
 0x170   :  { %v114_v16 = vmul.f32 1.442695, %v113_v15 }
 0x172   :  { %156 = vpow2.f32 %v114_v16 }
 0x17c   :  { %v157_v17 = vpop.eup %156 }
 0x17d   :  { %v116_v18 = vadd.f32 1.0, %v157_v17 }
 0x17f   :  { %158 = vrcp.f32 %v116_v18 }
 0x189   :  { %v159_v19 = vpop.eup %158 }
 0x18a   :  { %124 = vperm.xlu0 %154, %v159_v19   ;;  %v121_v20 = vsub.f32 1.0, %v159_v19 }
 0x18c   :  { %129 = vperm.xlu1 %155, %v121_v20  }
 0x209   :  { %v125_v23 = vpop.permute.xlu0 %124 }
 0x20b   :  { %v130_v24 = vpop.permute.xlu1 %129 }
 0x20c   :  { %v132_v25 = vsel %vm120_vm4, %v125_v23, %v130_v24 }
 0x20d   :  { %134 = vst.msk [vmem:[%s198_s2] sm:$0xff] %vm133_vm5, %v132_v25 }

</bundles_post_ra>
